<compile_context>
chip_gen: v7x
topology: tpu7x:2x2x1
jax: 0.10.0
libtpu: 0.0.40
codegen_flags: <defaults>
</compile_context>

<pallas_src>
import jax
import jax.numpy as jnp
from jax.experimental import pallas as pl
from jax.experimental.pallas import tpu as pltpu


def _ode_euler_kernel(dt_ref, adj_ref, ha_ref, m_ref, x_ref, x0_ref, out_ref):
    """One explicit Euler step on the lane-dense (B*N, T*F) slab.

    adj_ref : (B*N, B*N)  block-diagonal kron(I_B, adj)          -> graph mix (MXU)
    m_ref   : (T*F, T*F)  kron(I_T, w_eff) + kron(w2_eff, I_F)   -> feature+temporal mix (MXU)
    ha_ref  : (B*N, 1)    sigmoid(alpha)/2, tiled over batch
    dt_ref  : (1, 1)      t1 - t0, in SMEM
    """
    x = x_ref[...].astype(jnp.float32)        # (BN, TF)
    x0 = x0_ref[...].astype(jnp.float32)      # (BN, TF)

    # Graph mixing over nodes: single (BN, BN) @ (BN, TF) matmul.
    xa = jnp.dot(adj_ref[...], x, preferred_element_type=jnp.float32)
    # Fused feature + temporal mixing: single (BN, TF) @ (TF, TF) matmul.
    xm = jnp.dot(x, m_ref[...], preferred_element_type=jnp.float32)

    f = ha_ref[...] * xa - 3.0 * x + xm + x0
    # Single unmasked, fully lane-dense (TF = 256 lanes) store.
    out_ref[...] = (x + dt_ref[0, 0] * f).astype(out_ref.dtype)


def odeblock_forward(adj, alpha, w, d, w2, d2, x, x0, t):
    """Pallas implementation of ODEblock.forward (single Euler step, t=[t0, t1])."""
    B, N, T, F = x.shape
    BN, TF = B * N, T * F
    f32 = jnp.float32

    # ---- batch-invariant parameter prep, hoisted out of the kernel ----
    w_eff = jnp.dot(w * jnp.clip(d, 0.0, 1.0)[None, :], w.T)       # (F, F)
    w2_eff = jnp.dot(w2 * jnp.clip(d2, 0.0, 1.0)[None, :], w2.T)   # (T, T)
    # Fused (T*F, T*F) mixing operator: x_s @ M == xw + xw2 on the flattened slab.
    M = (jnp.kron(jnp.eye(T, dtype=f32), w_eff.astype(f32))
         + jnp.kron(w2_eff.astype(f32), jnp.eye(F, dtype=f32)))    # (TF, TF)
    # Block-diagonal adjacency so the graph mix is one matmul over the whole slab.
    adj_bd = jnp.kron(jnp.eye(B, dtype=f32), adj.astype(f32))      # (BN, BN)
    ha = jnp.tile(0.5 * jax.nn.sigmoid(alpha.astype(f32)).reshape(N, 1), (B, 1))  # (BN, 1)
    dt = (t[1] - t[0]).astype(f32).reshape(1, 1)

    # Lane-dense slabs: last dim T*F = 256.
    x_s = x.reshape(BN, TF)
    x0_s = x0.reshape(BN, TF)

    cost = pl.CostEstimate(
        flops=2 * BN * BN * TF + 2 * BN * TF * TF + 6 * BN * TF,
        transcendentals=0,
        bytes_accessed=4 * (BN * BN + TF * TF + BN + 3 * BN * TF + 1),
    )

    out = pl.pallas_call(
        _ode_euler_kernel,
        out_shape=jax.ShapeDtypeStruct((BN, TF), x.dtype),
        grid=(1,),
        in_specs=[
            pl.BlockSpec(memory_space=pltpu.MemorySpace.SMEM),   # dt (1, 1)
            pl.BlockSpec((BN, BN), lambda i: (0, 0)),            # adj_bd
            pl.BlockSpec((BN, 1), lambda i: (0, 0)),             # half-alpha
            pl.BlockSpec((TF, TF), lambda i: (0, 0)),            # fused mixing matrix M
            pl.BlockSpec((BN, TF), lambda i: (0, 0)),            # x slab
            pl.BlockSpec((BN, TF), lambda i: (0, 0)),            # x0 slab
        ],
        out_specs=pl.BlockSpec((BN, TF), lambda i: (0, 0)),
        compiler_params=pltpu.CompilerParams(
            dimension_semantics=("arbitrary",),
            vmem_limit_bytes=32 * 1024 * 1024,
        ),
        cost_estimate=cost,
    )(dt, adj_bd, ha, M, x_s, x0_s)

    return out.reshape(B, N, T, F)


def reference(adj, alpha, w, d, w2, d2, x, x0, t):
    """Pure-JAX replica of ODEblock.forward (Euler, t=[t0, t1])."""
    a = jax.nn.sigmoid(alpha)[None, :, None, None]
    xa = jnp.einsum('ij,kjlm->kilm', adj, x)
    w_eff = (w * jnp.clip(d, 0.0, 1.0)[None, :]) @ w.T
    xw = jnp.einsum('ijkl,lm->ijkm', x, w_eff)
    w2_eff = (w2 * jnp.clip(d2, 0.0, 1.0)[None, :]) @ w2.T
    xw2 = jnp.einsum('ijkl,km->ijml', x, w2_eff)
    f = a / 2 * xa - x + xw - x + xw2 - x + x0
    return x + (t[1] - t[0]) * f


if __name__ == "__main__":
    B, N, T, F = 2, 16, 8, 32  # batch, nodes, temporal_dim, feature_dim

    key = jax.random.PRNGKey(0)
    k_adj, k_w, k_w2, k_x = jax.random.split(key, 4)

    # Row-normalized adjacency (ODEFunc takes a precomputed normalized adj).
    a_raw = jax.random.uniform(k_adj, (N, N), jnp.float32)
    adj = a_raw / jnp.sum(a_raw, axis=1, keepdims=True)

    # Parameters per ODEFunc.__init__ (eye/ones), with a small deterministic
    # perturbation so the mixing matmuls are non-trivial.
    alpha = 0.8 * jnp.ones((N,), jnp.float32)
    w = jnp.eye(F, dtype=jnp.float32) + 0.01 * jax.random.normal(k_w, (F, F), jnp.float32)
    d = jnp.ones((F,), jnp.float32)
    w2 = jnp.eye(T, dtype=jnp.float32) + 0.01 * jax.random.normal(k_w2, (T, T), jnp.float32)
    d2 = jnp.ones((T,), jnp.float32)
    t = jnp.array([0.0, 1.0], jnp.float32)   # ODEblock default t

    x = jax.random.normal(k_x, (B, N, T, F), jnp.float32)
    x0 = x  # ODEblock.set_x0(x), as used in STGODE before calling forward

    out = jax.block_until_ready(odeblock_forward(adj, alpha, w, d, w2, d2, x, x0, t))
    ref = jax.block_until_ready(reference(adj, alpha, w, d, w2, d2, x, x0, t))

    err = float(jnp.max(jnp.abs(out - ref)))
    assert out.shape == (B, N, T, F) and out.dtype == jnp.float32
    assert jnp.allclose(out, ref, atol=1e-4, rtol=1e-4), f"max abs err = {err}"
    print("KERNEL_OK")
</pallas_src>

<mosaic_0001>
module attributes {stable_mosaic.version = 11 : i64} {
  func.func @_ode_euler_kernel(%arg0: i32, %arg1: memref<1x1xf32, #tpu.memory_space<smem>>, %arg2: memref<32x32xf32, #tpu.memory_space<vmem>>, %arg3: memref<32x1xf32, #tpu.memory_space<vmem>>, %arg4: memref<256x256xf32, #tpu.memory_space<vmem>>, %arg5: memref<32x256xf32, #tpu.memory_space<vmem>>, %arg6: memref<32x256xf32, #tpu.memory_space<vmem>>, %arg7: memref<32x256xf32, #tpu.memory_space<vmem>>) attributes {dimension_semantics = [#tpu.dimension_semantics<arbitrary>], iteration_bounds = array<i64: 1>, scalar_prefetch = 0 : i64, scratch_operands = 0 : i64, tpu.core_type = #tpu.core_type<tc>, window_params = [{transform_indices = @transform_0, window_bounds = array<i64: 1, 1>}, {pipeline_mode = #tpu.pipeline_mode<synchronous>, transform_indices = @transform_1, window_bounds = array<i64: 32, 32>}, {pipeline_mode = #tpu.pipeline_mode<synchronous>, transform_indices = @transform_2, window_bounds = array<i64: 32, 1>}, {pipeline_mode = #tpu.pipeline_mode<synchronous>, transform_indices = @transform_3, window_bounds = array<i64: 256, 256>}, {pipeline_mode = #tpu.pipeline_mode<synchronous>, transform_indices = @transform_4, window_bounds = array<i64: 32, 256>}, {pipeline_mode = #tpu.pipeline_mode<synchronous>, transform_indices = @transform_5, window_bounds = array<i64: 32, 256>}, {pipeline_mode = #tpu.pipeline_mode<synchronous>, transform_indices = @transform_6, window_bounds = array<i64: 32, 256>}]} {
    %c0 = arith.constant 0 : index
    %c0_0 = arith.constant 0 : index
    %0 = vector.load %arg5[%c0, %c0_0] : memref<32x256xf32, #tpu.memory_space<vmem>>, vector<32x256xf32>
    %c0_1 = arith.constant 0 : index
    %c0_2 = arith.constant 0 : index
    %1 = vector.load %arg6[%c0_1, %c0_2] : memref<32x256xf32, #tpu.memory_space<vmem>>, vector<32x256xf32>
    %c0_3 = arith.constant 0 : index
    %c0_4 = arith.constant 0 : index
    %2 = vector.load %arg2[%c0_3, %c0_4] : memref<32x32xf32, #tpu.memory_space<vmem>>, vector<32x32xf32>
    %cst = arith.constant dense<0.000000e+00> : vector<32x256xf32>
    %3 = tpu.matmul %2, %0, %cst {dimension_numbers = #tpu.dot_dimension_numbers<[1], [0], [0], [1], [0, 0, 1, 1], [], []>} : vector<32x32xf32>, vector<32x256xf32>, vector<32x256xf32> -> vector<32x256xf32>
    %c0_5 = arith.constant 0 : index
    %c0_6 = arith.constant 0 : index
    %4 = vector.load %arg4[%c0_5, %c0_6] : memref<256x256xf32, #tpu.memory_space<vmem>>, vector<256x256xf32>
    %cst_7 = arith.constant dense<0.000000e+00> : vector<32x256xf32>
    %5 = tpu.matmul %0, %4, %cst_7 {dimension_numbers = #tpu.dot_dimension_numbers<[1], [0], [0], [1], [0, 0, 1, 1], [], []>} : vector<32x256xf32>, vector<256x256xf32>, vector<32x256xf32> -> vector<32x256xf32>
    %c0_8 = arith.constant 0 : index
    %c0_9 = arith.constant 0 : index
    %6 = vector.load %arg3[%c0_8, %c0_9] : memref<32x1xf32, #tpu.memory_space<vmem>>, vector<32x1xf32>
    %7 = vector.broadcast %6 : vector<32x1xf32> to vector<32x256xf32>
    %8 = arith.mulf %7, %3 : vector<32x256xf32>
    %cst_10 = arith.constant 3.000000e+00 : f32
    %9 = vector.broadcast %cst_10 : f32 to vector<32x256xf32>
    %10 = arith.mulf %9, %0 : vector<32x256xf32>
    %11 = arith.subf %8, %10 : vector<32x256xf32>
    %12 = arith.addf %11, %5 : vector<32x256xf32>
    %13 = arith.addf %12, %1 : vector<32x256xf32>
    %c0_11 = arith.constant 0 : index
    %c0_12 = arith.constant 0 : index
    %14 = memref.load %arg1[%c0_11, %c0_12] : memref<1x1xf32, #tpu.memory_space<smem>>
    %15 = vector.broadcast %14 : f32 to vector<32x256xf32>
    %16 = arith.mulf %15, %13 : vector<32x256xf32>
    %17 = arith.addf %0, %16 : vector<32x256xf32>
    %c0_13 = arith.constant 0 : index
    %c0_14 = arith.constant 0 : index
    %18 = vector.load %arg7[%c0_13, %c0_14] : memref<32x256xf32, #tpu.memory_space<vmem>>, vector<32x256xf32>
    tpu.vector_store %arg7[%c0_13, %c0_14], %17 {strides = array<i32>} : memref<32x256xf32, #tpu.memory_space<vmem>>, vector<32x256xf32>,
    return
  }
  func.func @transform_0(%arg0: i32) -> (i32, i32) {
    %c0_i32 = arith.constant 0 : i32
    %c0_i32_0 = arith.constant 0 : i32
    %c0_i32_1 = arith.constant 0 : i32
    return %c0_i32, %c0_i32_0 : i32, i32
  }
  func.func @transform_1(%arg0: i32) -> (i32, i32) {
    %c0_i32 = arith.constant 0 : i32
    %c0_i32_0 = arith.constant 0 : i32
    %c0_i32_1 = arith.constant 0 : i32
    return %c0_i32, %c0_i32_0 : i32, i32
  }
  func.func @transform_2(%arg0: i32) -> (i32, i32) {
    %c0_i32 = arith.constant 0 : i32
    %c0_i32_0 = arith.constant 0 : i32
    %c0_i32_1 = arith.constant 0 : i32
    return %c0_i32, %c0_i32_0 : i32, i32
  }
  func.func @transform_3(%arg0: i32) -> (i32, i32) {
    %c0_i32 = arith.constant 0 : i32
    %c0_i32_0 = arith.constant 0 : i32
    %c0_i32_1 = arith.constant 0 : i32
    return %c0_i32, %c0_i32_0 : i32, i32
  }
  func.func @transform_4(%arg0: i32) -> (i32, i32) {
    %c0_i32 = arith.constant 0 : i32
    %c0_i32_0 = arith.constant 0 : i32
    %c0_i32_1 = arith.constant 0 : i32
    return %c0_i32, %c0_i32_0 : i32, i32
  }
  func.func @transform_5(%arg0: i32) -> (i32, i32) {
    %c0_i32 = arith.constant 0 : i32
    %c0_i32_0 = arith.constant 0 : i32
    %c0_i32_1 = arith.constant 0 : i32
    return %c0_i32, %c0_i32_0 : i32, i32
  }
  func.func @transform_6(%arg0: i32) -> (i32, i32) {
    %c0_i32 = arith.constant 0 : i32
    %c0_i32_0 = arith.constant 0 : i32
    %c0_i32_1 = arith.constant 0 : i32
    return %c0_i32, %c0_i32_0 : i32, i32
  }
}

</mosaic_0001>

<bundles_post_ra>
// kernel: tpu_custom_call.1
= control target key start
LH: loop header
LB: loop body
LE: loop exit
PB: predicated region body
PF: predicated region fallthrough
CT: control target
= control target key end

     0   :  { %12 = vsyncpa [#allocation4], 0  ;;  %s854_s0 = inlined_call_operand.<no memory space> [shape: f32[1,1], index: 0, kind: input, shape index: {}]   ;;  %s855_s1 = inlined_call_operand.vmem [shape: f32[32,32], index: 1, kind: input, shape index: {}]   ;;  %s856_s2 = inlined_call_operand.vmem [shape: f32[32,1], index: 2, kind: input, shape index: {}]   ;;  %s857_s3 = inlined_call_operand.hbm [shape: f32[256,256], index: 3, kind: input, shape index: {}]   ;;  %s858_s4 = inlined_call_operand.hbm [shape: f32[32,256], index: 4, kind: input, shape index: {}]   ;;  %s859_s5 = inlined_call_operand.hbm [shape: f32[32,256], index: 5, kind: input, shape index: {}]   ;;  %s860_s6 = inlined_call_operand.hbm [shape: f32[32,256], index: 6, kind: output, shape index: {}]  }
   0x1   :  { %13 = vsyncpa [#allocation7], 0 }
   0x2   :  { %14 = vsyncpa [#allocation5], 0  ;;  %s661_s21 = smov [#allocation6]   ;;  %s662_s23 = smov [#allocation3]  }
   0x3   :  { %s38_s22 = sshll.u32 %s661_s21, 4  ;;  %s26_s24 = sshll.u32 %s662_s23, 4  ;;  %s39_s22 = int_to_ptr.vmem [resolvable:$true] %s38_s22  ;;  %s704_s24 = int_to_ptr.vmem [resolvable:$true] %s26_s24 }
   0x4   :  { %s567_s27 = scalar_lea.hbm %s858_s4, 1024 }
   0x5   :  { %p568_p0 = scmp.ne.s32.totalorder %s858_s4, %s567_s27  ;;  %p571_p1 = scmp.lt.u32.totalorder %s567_s27, %s858_s4 }
   0x7   :  { %p573_p2 = pnand %p571_p1, %p568_p0 }
   0x9   :  { %576 = shalt.err (!%p573_p2)
}
   0xa   :  { %s577_s8 = scalar_lea.vmem %s39_s22, 1024  ;;  %p582_p4 = scmp.lt.s32.totalorder %s39_s22, %s39_s22 }
   0xb   :  { %p578_p3 = scmp.ne.s32.totalorder %s39_s22, %s577_s8  ;;  %p583_p5 = scmp.lt.s32.totalorder %s577_s8, %s577_s8 }
   0xd   :  { %p584_p6 = por %p583_p5, %p582_p4 }
   0xf   :  { %p585_p7 = pnand %p584_p6, %p578_p3 }
  0x11   :  { %588 = shalt.err (!%p585_p7)
}
  0x12   :  { %s663_s9 = smov 256   ;;  %s664_s10 = smov 16  }
  0x13   :  { %44 = dma.hbm_to_vmem [thread:$0]  %s858_s4, 1024, %s39_s22, [#allocation7], %s663_s9, %s663_s9, %s664_s10  }
  0x14   :  { %s589_s15 = scalar_lea.hbm %s857_s3, 8192 }
  0x15   :  { %p590_p8 = scmp.ne.s32.totalorder %s857_s3, %s589_s15  ;;  %p593_p9 = scmp.lt.u32.totalorder %s589_s15, %s857_s3 }
  0x17   :  { %p595_p10 = pnand %p593_p9, %p590_p8 }
  0x19   :  { %598 = shalt.err (!%p595_p10)
}
  0x1a   :  { %s599_s20 = scalar_lea.vmem %s704_s24, 8192  ;;  %p604_p12 = scmp.lt.s32.totalorder %s704_s24, %s704_s24 }
  0x1b   :  { %p600_p11 = scmp.ne.s32.totalorder %s704_s24, %s599_s20  ;;  %p605_p13 = scmp.lt.s32.totalorder %s599_s20, %s599_s20 }
  0x1d   :  { %p606_p0 = por %p605_p13, %p604_p12 }
  0x1f   :  { %p607_p1 = pnand %p606_p0, %p600_p11 }
  0x21   :  { %610 = shalt.err (!%p607_p1)
}
  0x22   :  { %32 = dma.hbm_to_vmem [thread:$0]  %s857_s3, 8192, %s704_s24, [#allocation4], %s663_s9, %s663_s9, %s664_s10  }
  0x23   :  { %s665_s22 = smov [#allocation8]   ;;  %s611_s27 = scalar_lea.hbm %s859_s5, 1024 }
  0x24   :  { %s50_s23 = sshll.u32 %s665_s22, 4  ;;  %p612_p2 = scmp.ne.s32.totalorder %s859_s5, %s611_s27  ;;  %s51_s23 = int_to_ptr.vmem [resolvable:$true] %s50_s23 }
  0x25   :  { %p615_p3 = scmp.lt.u32.totalorder %s611_s27, %s859_s5 }
  0x27   :  { %p617_p4 = pnand %p615_p3, %p612_p2 }
  0x29   :  { %620 = shalt.err (!%p617_p4)
}
  0x2a   :  { %s621_s8 = scalar_lea.vmem %s51_s23, 1024  ;;  %p626_p6 = scmp.lt.s32.totalorder %s51_s23, %s51_s23 }
  0x2b   :  { %p622_p5 = scmp.ne.s32.totalorder %s51_s23, %s621_s8  ;;  %p627_p7 = scmp.lt.s32.totalorder %s621_s8, %s621_s8 }
  0x2d   :  { %p628_p8 = por %p627_p7, %p626_p6 }
  0x2f   :  { %p629_p9 = pnand %p628_p8, %p622_p5 }
  0x31   :  { %632 = shalt.err (!%p629_p9)
}
  0x32   :  { %56 = dma.hbm_to_vmem [thread:$0]  %s859_s5, 1024, %s51_s23, [#allocation7], %s663_s9, %s663_s9, %s664_s10  }
  0x33   :  { %655 = dma.done.wait [#allocation4], 8192  }
  0x34   :  { %656 = vsyncadd [#allocation4], 4294959104 }
  0x35   :  { %657 = dma.done.wait [#allocation7], 2048  }
  0x36   :  { %658 = vsyncadd [#allocation7], 4294965248  ;;  %v666_v0 = vmov 0.0   ;;  %v667_v1 = vmov 0   ;;  %v757_v2 = vld [vmem:[#allocation6 + $0x8] sm:$0xff]  ;;  %v759_v3 = vld [vmem:[#allocation6 + $0x18] sm:$0xff] }
  0x37   :  { %163 = vmatprep.mubr.f32.mxu0 %v666_v0  ;;  %565 = vset.pattern.permute.xlu0 %v667_v1  ;;  %v189_v4 = vld [vmem:[#allocation3 + $0x8] sm:$0xff]  ;;  %v453_v5 = vpack.c.bf16 %v759_v3, %v757_v2  ;;  %v191_v6 = vld [vmem:[#allocation3 + $0x18] sm:$0xff]  ;;  %v763_v7 = vld [vmem:[#allocation6] sm:$0xff]  ;;  %vm86_vm0 = vcmask 261120  }
  0x38   :  { %566 = vset.pattern.permute.xlu1 %v667_v1  ;;  %v765_v8 = vld [vmem:[#allocation6 + $0x10] sm:$0xff]  ;;  %322 = vmatprep.mubr.f32.mxu1 %v759_v3  ;;  %v461_v9 = vpack.c.bf16 %v191_v6, %v189_v4  ;;  %v188_v11 = vld [vmem:[#allocation3] sm:$0xff]  ;;  %v770_v13 = vld [vmem:[#allocation6 + $0x28] sm:$0xff] }
  0x39   :  { %v455_v10 = vpack.c.bf16 %v765_v8, %v763_v7  ;;  %v190_v12 = vld [vmem:[#allocation3 + $0x10] sm:$0xff]  ;;  %454 = vmatprep.subr.bf16.mxu0 %v453_v5  ;;  %v772_v15 = vld [vmem:[#allocation6 + $0x38] sm:$0xff]  ;;  %v193_v16 = vld [vmem:[#allocation3 + $0x28] sm:$0xff] }
  0x3a   :  { %v463_v14 = vpack.c.bf16 %v190_v12, %v188_v11  ;;  %v195_v17 = vld [vmem:[#allocation3 + $0x38] sm:$0xff]  ;;  %525 = vmatprep.subr.bf16.mxu1 %v461_v9  ;;  %v457_v18 = vpack.c.bf16 %v772_v15, %v770_v13  ;;  %v776_v20 = vld [vmem:[#allocation6 + $0x20] sm:$0xff]  ;;  %v778_v21 = vld [vmem:[#allocation6 + $0x30] sm:$0xff] }
  0x3b   :  { %456 = vmatpush1.bf16.msra.mxu0 %v455_v10  ;;  %v465_v19 = vpack.c.bf16 %v195_v17, %v193_v16  ;;  %v192_v22 = vld [vmem:[#allocation3 + $0x20] sm:$0xff]  ;;  %v459_v23 = vpack.c.bf16 %v778_v21, %v776_v20  ;;  %v194_v24 = vld [vmem:[#allocation3 + $0x30] sm:$0xff]  ;;  %v197_v25 = vld [vmem:[#allocation3 + $0x48] sm:$0xff] }
  0x3c   :  { %541 = vmatpush1.bf16.msra.mxu1 %v463_v14  ;;  %458 = vmatprep.subr.bf16.mxu0 %v457_v18  ;;  %v467_v26 = vpack.c.bf16 %v194_v24, %v192_v22  ;;  %v199_v27 = vld [vmem:[#allocation3 + $0x58] sm:$0xff]  ;;  %v196_v28 = vld [vmem:[#allocation3 + $0x40] sm:$0xff]  ;;  %v198_v29 = vld [vmem:[#allocation3 + $0x50] sm:$0xff] }
  0x3d   :  { %526 = vmatprep.subr.bf16.mxu1 %v465_v19  ;;  %v469_v30 = vpack.c.bf16 %v199_v27, %v197_v25  ;;  %v201_v31 = vld [vmem:[#allocation3 + $0x68] sm:$0xff]  ;;  %v203_v32 = vld [vmem:[#allocation3 + $0x78] sm:$0xff]  ;;  %v82_v33 = vld [vmem:[%s855_s1] sm:$0xff]  ;;  %v471_v34 = vpack.c.bf16 %v198_v29, %v196_v28 }
  0x3e   :  { %v473_v35 = vpack.c.bf16 %v203_v32, %v201_v31  ;;  %v200_v36 = vld [vmem:[#allocation3 + $0x60] sm:$0xff]  ;;  %v202_v37 = vld [vmem:[#allocation3 + $0x70] sm:$0xff]  ;;  %v205_v38 = vld [vmem:[#allocation3 + $0x88] sm:$0xff] }
  0x3f   :  { %460 = vmatpush1.bf16.msra.mxu0 %v459_v23  ;;  %v207_v39 = vld [vmem:[#allocation3 + $0x98] sm:$0xff]  ;;  %v475_v40 = vpack.c.bf16 %v202_v37, %v200_v36  ;;  %v204_v42 = vld [vmem:[#allocation3 + $0x80] sm:$0xff]  ;;  %v206_v43 = vld [vmem:[#allocation3 + $0x90] sm:$0xff] }
  0x40   :  { %542 = vmatpush1.bf16.msra.mxu1 %v467_v26  ;;  %462 = vmatprep.subr.bf16.mxu0 %v461_v9  ;;  %v477_v41 = vpack.c.bf16 %v207_v39, %v205_v38  ;;  %v209_v44 = vld [vmem:[#allocation3 + $0xa8] sm:$0xff]  ;;  %v211_v45 = vld [vmem:[#allocation3 + $0xb8] sm:$0xff]  ;;  %v479_v46 = vpack.c.bf16 %v206_v43, %v204_v42  ;;  %v208_v48 = vld [vmem:[#allocation3 + $0xa0] sm:$0xff] }
  0x41   :  { %527 = vmatprep.subr.bf16.mxu1 %v469_v30  ;;  %v481_v47 = vpack.c.bf16 %v211_v45, %v209_v44  ;;  %v210_v49 = vld [vmem:[#allocation3 + $0xb0] sm:$0xff]  ;;  %v213_v50 = vld [vmem:[#allocation3 + $0xc8] sm:$0xff]  ;;  %v215_v51 = vld [vmem:[#allocation3 + $0xd8] sm:$0xff] }
  0x42   :  { %449 = vmatmul.mubr.msk.f32.vlgmr.msra.gmra.mrb[0].mxu0 %vm86_vm0, %v82_v33  ;;  %v483_v52 = vpack.c.bf16 %v210_v49, %v208_v48  ;;  %v83_v53 = vld [vmem:[%s855_s1 + $0x8] sm:$0xff]  ;;  %v485_v54 = vpack.c.bf16 %v215_v51, %v213_v50  ;;  %v212_v55 = vld [vmem:[#allocation3 + $0xc0] sm:$0xff]  ;;  %v214_v56 = vld [vmem:[#allocation3 + $0xd0] sm:$0xff] }
  0x43   :  { %464 = vmatpush1.bf16.msra.mxu0 %v463_v14  ;;  %169 = vmatprep.mubr.f32.mxu0 %v666_v0  ;;  %v217_v57 = vld [vmem:[#allocation3 + $0xe8] sm:$0xff]  ;;  %v219_v58 = vld [vmem:[#allocation3 + $0xf8] sm:$0xff]  ;;  %v84_v59 = vld [vmem:[%s855_s1 + $0x10] sm:$0xff]  ;;  %v487_v60 = vpack.c.bf16 %v214_v56, %v212_v55 }
  0x44   :  { %543 = vmatpush1.bf16.msra.mxu1 %v471_v34  ;;  %466 = vmatprep.subr.bf16.mxu0 %v465_v19  ;;  %v341_v61 = vld [vmem:[%s856_s2] sm:$0xff]  ;;  %v489_v62 = vpack.c.bf16 %v219_v58, %v217_v57  ;;  %v218_v1 = vld [vmem:[#allocation3 + $0xf0] sm:$0xff]  ;;  %v221_v5 = vld [vmem:[#allocation3 + $0x108] sm:$0xff] }
  0x45   :  { %528 = vmatprep.subr.bf16.mxu1 %v473_v35  ;;  %v216_v63 = vld [vmem:[#allocation3 + $0xe0] sm:$0xff]  ;;  %v343_v4 = vld [vmem:[%s856_s2 + $0x10] sm:$0xff]  ;;  %v223_v6 = vld [vmem:[#allocation3 + $0x118] sm:$0xff]  ;;  %347 = vperm.xlu0 %565, %v341_v61  }
  0x46   :  { %450 = vmatmul.mubr.msk.f32.gmra.mrb[2].mxu0 %vm86_vm0, %v83_v53  ;;  %v85_v9 = vld [vmem:[%s855_s1 + $0x18] sm:$0xff]  ;;  %v342_v10 = vld [vmem:[%s856_s2 + $0x8] sm:$0xff]  ;;  %357 = vperm.xlu1 %566, %v343_v4   ;;  %v491_v11 = vpack.c.bf16 %v218_v1, %v216_v63  ;;  %v220_v14 = vld [vmem:[#allocation3 + $0x100] sm:$0xff] }
  0x47   :  { %468 = vmatpush1.bf16.msra.mxu0 %v467_v26  ;;  %175 = vmatprep.mubr.f32.mxu0 %v666_v0  ;;  %v344_v12 = vld [vmem:[%s856_s2 + $0x18] sm:$0xff]  ;;  %v222_v16 = vld [vmem:[#allocation3 + $0x110] sm:$0xff]  ;;  %v225_v17 = vld [vmem:[#allocation3 + $0x128] sm:$0xff] }
  0x48   :  { %544 = vmatpush1.bf16.msra.mxu1 %v475_v40  ;;  %470 = vmatprep.subr.bf16.mxu0 %v469_v30  ;;  %v227_v18 = vld [vmem:[#allocation3 + $0x138] sm:$0xff]  ;;  %v495_v19 = vpack.c.bf16 %v222_v16, %v220_v14  ;;  %v224_v23 = vld [vmem:[#allocation3 + $0x120] sm:$0xff]  ;;  %v226_v24 = vld [vmem:[#allocation3 + $0x130] sm:$0xff]  ;;  %v375_v14 = vmul.f32 3.0, %v765_v8 }
  0x49   :  { %529 = vmatprep.subr.bf16.mxu1 %v477_v41  ;;  %352 = vperm.xlu0 %565, %v342_v10   ;;  %v497_v22 = vpack.c.bf16 %v227_v18, %v225_v17  ;;  %v229_v25 = vld [vmem:[#allocation3 + $0x148] sm:$0xff]  ;;  %v231_v26 = vld [vmem:[#allocation3 + $0x158] sm:$0xff]  ;;  %v499_v27 = vpack.c.bf16 %v226_v24, %v224_v23  ;;  %v228_v29 = vld [vmem:[#allocation3 + $0x140] sm:$0xff]  ;;  %v376_v18 = vmul.f32 3.0, %v759_v3  ;;  %v377_v23 = vmul.f32 3.0, %v776_v20 }
  0x4a   :  { %451 = vmatmul.mubr.msk.f32.gmra.mrb[4].mxu0 %vm86_vm0, %v84_v59  ;;  %362 = vperm.xlu1 %566, %v344_v12   ;;  %v501_v28 = vpack.c.bf16 %v231_v26, %v229_v25  ;;  %v230_v30 = vld [vmem:[#allocation3 + $0x150] sm:$0xff]  ;;  %v233_v31 = vld [vmem:[#allocation3 + $0x168] sm:$0xff]  ;;  %v235_v32 = vld [vmem:[#allocation3 + $0x178] sm:$0xff]  ;;  %v378_v26 = vmul.f32 3.0, %v770_v13 }
  0x4b   :  { %472 = vmatpush1.bf16.msra.mxu0 %v471_v34  ;;  %181 = vmatprep.mubr.f32.mxu0 %v666_v0  ;;  %v493_v0 = vpack.c.bf16 %v223_v6, %v221_v5  ;;  %v503_v33 = vpack.c.bf16 %v230_v30, %v228_v29  ;;  %v505_v34 = vpack.c.bf16 %v235_v32, %v233_v31  ;;  %v234_v36 = vld [vmem:[#allocation3 + $0x170] sm:$0xff]  ;;  %v237_v37 = vld [vmem:[#allocation3 + $0x188] sm:$0xff]  ;;  %v239_v38 = vld [vmem:[#allocation3 + $0x198] sm:$0xff] }
  0x4c   :  { %545 = vmatpush1.bf16.msra.mxu1 %v479_v46  ;;  %474 = vmatprep.subr.bf16.mxu0 %v473_v35  ;;  %v232_v35 = vld [vmem:[#allocation3 + $0x160] sm:$0xff]  ;;  %v238_v42 = vld [vmem:[#allocation3 + $0x190] sm:$0xff]  ;;  %v241_v43 = vld [vmem:[#allocation3 + $0x1a8] sm:$0xff] }
  0x4d   :  { %530 = vmatprep.subr.bf16.mxu1 %v481_v47  ;;  %v507_v39 = vpack.c.bf16 %v234_v36, %v232_v35  ;;  %v243_v44 = vld [vmem:[#allocation3 + $0x1b8] sm:$0xff]  ;;  %v242_v48 = vld [vmem:[#allocation3 + $0x1b0] sm:$0xff]  ;;  %v245_v49 = vld [vmem:[#allocation3 + $0x1c8] sm:$0xff]  ;;  %v374_v35 = vmul.f32 3.0, %v757_v2 }
  0x4e   :  { %452 = vmatmul.mubr.msk.f32.gmra.mrb[6].mxu0 %vm86_vm0, %v85_v9  ;;  %v247_v50 = vld [vmem:[#allocation3 + $0x1d8] sm:$0xff]  ;;  %v244_v53 = vld [vmem:[#allocation3 + $0x1c0] sm:$0xff]  ;;  %v249_v55 = vld [vmem:[#allocation3 + $0x1e8] sm:$0xff] }
  0x4f   :  { %476 = vmatpush1.bf16.msra.mxu0 %v475_v40  ;;  %316 = vmatprep.mubr.f32.mxu0 %v757_v2  ;;  %v509_v40 = vpack.c.bf16 %v239_v38, %v237_v37  ;;  %v251_v56 = vld [vmem:[#allocation3 + $0x1f8] sm:$0xff]  ;;  %v248_v59 = vld [vmem:[#allocation3 + $0x1e0] sm:$0xff]  ;;  %v406_v37 = vstv %s854_s0  ;;  %s668_s0 = smov [#allocation9]  }
  0x50   :  { %546 = vmatpush1.bf16.msra.mxu1 %v483_v52  ;;  %478 = vmatprep.subr.bf16.mxu0 %v477_v41  ;;  %v236_v41 = vld [vmem:[#allocation3 + $0x180] sm:$0xff]  ;;  %v521_v58 = vpack.c.bf16 %v251_v56, %v249_v55  ;;  %v77_v31 = vld [vmem:[#allocation8 + $0x18] sm:$0xff]  ;;  %s436_s26 = sshll.u32 %s668_s0, 4  ;;  %s437_s26 = int_to_ptr.vmem [resolvable:$true] %s436_s26 }
  0x51   :  { %531 = vmatprep.subr.bf16.mxu1 %v485_v54  ;;  %v511_v45 = vpack.c.bf16 %v238_v42, %v236_v41  ;;  %s633_s27 = scalar_lea.vmem %s437_s26, 1024  ;;  %p638_p11 = scmp.lt.s32.totalorder %s437_s26, %s437_s26 }
  0x52   :  { %p634_p10 = scmp.ne.s32.totalorder %s437_s26, %s633_s27  ;;  %p639_p12 = scmp.lt.s32.totalorder %s633_s27, %s633_s27 }
  0x53   :  { %480 = vmatpush1.bf16.msra.mxu0 %v479_v46  ;;  %v513_v46 = vpack.c.bf16 %v243_v44, %v241_v43  ;;  %v379_v43 = vmul.f32 3.0, %v778_v21 }
  0x54   :  { %547 = vmatpush1.bf16.msra.mxu1 %v487_v60  ;;  %482 = vmatprep.subr.bf16.mxu0 %v481_v47  ;;  %v240_v47 = vld [vmem:[#allocation3 + $0x1a0] sm:$0xff]  ;;  %p640_p13 = por %p639_p12, %p638_p11 }
  0x55   :  { %532 = vmatprep.subr.bf16.mxu1 %v489_v62  ;;  %v515_v51 = vpack.c.bf16 %v242_v48, %v240_v47  ;;  %v380_v48 = vmul.f32 3.0, %v772_v15 }
  0x56   :  { %p641_p0 = pnand %p640_p13, %p634_p10 }
  0x57   :  { %484 = vmatpush1.bf16.msra.mxu0 %v483_v52  ;;  %v517_v52 = vpack.c.bf16 %v247_v50, %v245_v49 }
  0x58   :  { %548 = vmatpush1.bf16.msra.mxu1 %v491_v11  ;;  %486 = vmatprep.subr.bf16.mxu0 %v485_v54  ;;  %v246_v54 = vld [vmem:[#allocation3 + $0x1d0] sm:$0xff] }
  0x59   :  { %533 = vmatprep.subr.bf16.mxu1 %v493_v0  ;;  %v519_v57 = vpack.c.bf16 %v246_v54, %v244_v53 }
  0x5b   :  { %488 = vmatpush1.bf16.msra.mxu0 %v487_v60  ;;  %v250_v60 = vld [vmem:[#allocation3 + $0x1f0] sm:$0xff] }
  0x5c   :  { %549 = vmatpush1.bf16.msra.mxu1 %v495_v19  ;;  %490 = vmatprep.subr.bf16.mxu0 %v489_v62  ;;  %v523_v61 = vpack.c.bf16 %v250_v60, %v248_v59 }
  0x5d   :  { %534 = vmatprep.subr.bf16.mxu1 %v497_v22 }
  0x5f   :  { %492 = vmatpush1.bf16.msra.mxu0 %v491_v11 }
  0x60   :  { %550 = vmatpush1.bf16.msra.mxu1 %v499_v27  ;;  %494 = vmatprep.subr.bf16.mxu0 %v493_v0 }
  0x61   :  { %535 = vmatprep.subr.bf16.mxu1 %v501_v28 }
  0x63   :  { %496 = vmatpush1.bf16.msra.mxu0 %v495_v19 }
  0x64   :  { %551 = vmatpush1.bf16.msra.mxu1 %v503_v33  ;;  %498 = vmatprep.subr.bf16.mxu0 %v497_v22 }
  0x65   :  { %536 = vmatprep.subr.bf16.mxu1 %v505_v34 }
  0x67   :  { %500 = vmatpush1.bf16.msra.mxu0 %v499_v27  ;;  %v76_v27 = vld [vmem:[#allocation8 + $0x10] sm:$0xff] }
  0x68   :  { %552 = vmatpush1.bf16.msra.mxu1 %v507_v39  ;;  %502 = vmatprep.subr.bf16.mxu0 %v501_v28 }
  0x69   :  { %537 = vmatprep.subr.bf16.mxu1 %v509_v40 }
  0x6b   :  { %504 = vmatpush1.bf16.msra.mxu0 %v503_v33 }
  0x6c   :  { %553 = vmatpush1.bf16.msra.mxu1 %v511_v45  ;;  %506 = vmatprep.subr.bf16.mxu0 %v505_v34  ;;  %v373_v34 = vmul.f32 3.0, %v763_v7 }
  0x6d   :  { %538 = vmatprep.subr.bf16.mxu1 %v513_v46 }
  0x6f   :  { %508 = vmatpush1.bf16.msra.mxu0 %v507_v39 }
  0x70   :  { %554 = vmatpush1.bf16.msra.mxu1 %v515_v51  ;;  %510 = vmatprep.subr.bf16.mxu0 %v509_v40 }
  0x71   :  { %539 = vmatprep.subr.bf16.mxu1 %v517_v52 }
  0x73   :  { %512 = vmatpush1.bf16.msra.mxu0 %v511_v45 }
  0x74   :  { %555 = vmatpush1.bf16.msra.mxu1 %v519_v57  ;;  %514 = vmatprep.subr.bf16.mxu0 %v513_v46  ;;  %v78_v46 = vld [vmem:[#allocation8 + $0x20] sm:$0xff] }
  0x75   :  { %540 = vmatprep.subr.bf16.mxu1 %v521_v58 }
  0x77   :  { %516 = vmatpush1.bf16.msra.mxu0 %v515_v51  ;;  %v79_v51 = vld [vmem:[#allocation8 + $0x28] sm:$0xff] }
  0x78   :  { %556 = vmatpush1.bf16.msra.mxu1 %v523_v61  ;;  %518 = vmatprep.subr.bf16.mxu0 %v517_v52 }
  0x7b   :  { %323 = vmatmul.mubr.f32.vlgmr.msra.gmra.mrb[0].mxu1 %v765_v8  ;;  %520 = vmatpush1.bf16.msra.mxu0 %v519_v57 }
  0x7c   :  { %328 = vmatprep.mubr.f32.mxu1 %v770_v13  ;;  %522 = vmatprep.subr.bf16.mxu0 %v521_v58  ;;  %v74_v58 = vld [vmem:[#allocation8] sm:$0xff] }
  0x7f   :  { %329 = vmatmul.mubr.f32.gmra.mrb[2].mxu1 %v776_v20  ;;  %524 = vmatpush1.bf16.msra.mxu0 %v523_v61 }
  0x80   :  { %334 = vmatprep.mubr.f32.mxu1 %v772_v15 }
  0x82   :  { %317 = vmatmul.mubr.f32.vlgmr.msra.gmra.mrb[8].mxu0 %v763_v7 }
  0x83   :  { %335 = vmatmul.mubr.f32.gmra.mrb[4].mxu1 %v778_v21 }
  0xc4   :  { %v348_v11 = vpop.permute.xlu0 %347 }
  0xc5   :  { %v358_v17 = vpop.permute.xlu1 %357 }
  0xc8   :  { %v353_v12 = vpop.permute.xlu0 %352 }
  0xc9   :  { %v363_v29 = vpop.permute.xlu1 %362 }
 0x115   :  { %v165_v62 = vpop.f32.mrb[0].mxu0 }
 0x116   :  { %v167_v63 = vpop.f32.mrb[1].mxu0  ;;  %v365_v36 = vmul.f32 %v348_v11, %v165_v62 }
 0x117   :  { %v366_v40 = vmul.f32 %v348_v11, %v167_v63 }
 0x118   :  { %v381_v55 = vsub.f32 %v365_v36, %v373_v34 }
 0x119   :  { %v171_v1 = vpop.f32.mrb[2].mxu0  ;;  %v382_v61 = vsub.f32 %v366_v40, %v374_v35 }
 0x11a   :  { %v173_v4 = vpop.f32.mrb[3].mxu0  ;;  %v367_v0 = vmul.f32 %v353_v12, %v171_v1 }
 0x11b   :  { %v368_v16 = vmul.f32 %v353_v12, %v173_v4  ;;  %v80_v4 = vld [vmem:[#allocation8 + $0x30] sm:$0xff] }
 0x11c   :  { %v383_v22 = vsub.f32 %v367_v0, %v375_v14  ;;  %v81_v14 = vld [vmem:[#allocation8 + $0x38] sm:$0xff] }
 0x11d   :  { %v177_v5 = vpop.f32.mrb[4].mxu0  ;;  %v384_v25 = vsub.f32 %v368_v16, %v376_v18 }
 0x11e   :  { %v179_v6 = vpop.f32.mrb[5].mxu0  ;;  %v369_v19 = vmul.f32 %v358_v17, %v177_v5 }
 0x11f   :  { %v370_v24 = vmul.f32 %v358_v17, %v179_v6  ;;  %v75_v6 = vld [vmem:[#allocation8 + $0x8] sm:$0xff] }
 0x120   :  { %v385_v33 = vsub.f32 %v369_v19, %v377_v23 }
 0x121   :  { %v183_v9 = vpop.f32.mrb[6].mxu0  ;;  %v386_v39 = vsub.f32 %v370_v24, %v378_v26 }
 0x122   :  { %v185_v10 = vpop.f32.mrb[7].mxu0  ;;  %v371_v42 = vmul.f32 %v363_v29, %v183_v9 }
 0x123   :  { %v372_v44 = vmul.f32 %v363_v29, %v185_v10 }
 0x124   :  { %v387_v60 = vsub.f32 %v371_v42, %v379_v43 }
 0x125   :  { %v388_v10 = vsub.f32 %v372_v44, %v380_v48 }
 0x14e   :  { %v324_v28 = vpop.f32.mrb[0].mxu1 }
 0x14f   :  { %v391_v30 = vadd.f32 %v383_v22, %v324_v28  ;;  %v326_v32 = vpop.f32.mrb[1].mxu1 }
 0x150   :  { %v392_v38 = vadd.f32 %v384_v25, %v326_v32 }
 0x151   :  { %v399_v41 = vadd.f32 %v391_v30, %v76_v27 }
 0x152   :  { %v400_v45 = vadd.f32 %v392_v38, %v77_v31  ;;  %v330_v47 = vpop.f32.mrb[2].mxu1 }
 0x153   :  { %v409_v49 = vmul.f32 %v406_v37, %v399_v41  ;;  %v393_v50 = vadd.f32 %v385_v33, %v330_v47  ;;  %v332_v52 = vpop.f32.mrb[3].mxu1 }
 0x154   :  { %v410_v53 = vmul.f32 %v406_v37, %v400_v45  ;;  %v394_v54 = vadd.f32 %v386_v39, %v332_v52 }
 0x155   :  { %v417_v56 = vadd.f32 %v409_v49, %v765_v8  ;;  %v401_v57 = vadd.f32 %v393_v50, %v78_v46  ;;  %v318_v59 = vpop.f32.mrb[8].mxu0 }
 0x156   :  { %v418_v62 = vadd.f32 %v410_v53, %v759_v3  ;;  %v402_v63 = vadd.f32 %v394_v54, %v79_v51  ;;  %v389_v1 = vadd.f32 %v381_v55, %v318_v59  ;;  %v336_v5 = vpop.f32.mrb[4].mxu1  ;;  %v320_v9 = vpop.f32.mrb[9].mxu0 }
 0x157   :  { %425 = vst [vmem:[#allocation9 + $0x10] sm:$0xff] %v417_v56  ;;  %v411_v11 = vmul.f32 %v406_v37, %v401_v57  ;;  %v395_v12 = vadd.f32 %v387_v60, %v336_v5  ;;  %v390_v0 = vadd.f32 %v382_v61, %v320_v9  ;;  %v338_v8 = vpop.f32.mrb[5].mxu1 }
 0x158   :  { %426 = vst [vmem:[#allocation9 + $0x18] sm:$0xff] %v418_v62  ;;  %v412_v16 = vmul.f32 %v406_v37, %v402_v63  ;;  %v397_v17 = vadd.f32 %v389_v1, %v74_v58  ;;  %v396_v18 = vadd.f32 %v388_v10, %v338_v8 }
 0x159   :  { %v419_v19 = vadd.f32 %v411_v11, %v776_v20  ;;  %v403_v3 = vadd.f32 %v395_v12, %v80_v4  ;;  %v398_v22 = vadd.f32 %v390_v0, %v75_v6 }
 0x15a   :  { %v420_v23 = vadd.f32 %v412_v16, %v770_v13  ;;  %v407_v24 = vmul.f32 %v406_v37, %v397_v17  ;;  %v404_v25 = vadd.f32 %v396_v18, %v81_v14 }
 0x15b   :  { %427 = vst [vmem:[#allocation9 + $0x20] sm:$0xff] %v419_v19  ;;  %v413_v26 = vmul.f32 %v406_v37, %v403_v3  ;;  %v408_v27 = vmul.f32 %v406_v37, %v398_v22 }
 0x15c   :  { %428 = vst [vmem:[#allocation9 + $0x28] sm:$0xff] %v420_v23  ;;  %v415_v28 = vadd.f32 %v407_v24, %v763_v7  ;;  %v414_v29 = vmul.f32 %v406_v37, %v404_v25 }
 0x15d   :  { %v421_v30 = vadd.f32 %v413_v26, %v778_v21  ;;  %v416_v31 = vadd.f32 %v408_v27, %v757_v2 }
 0x15e   :  { %423 = vst [vmem:[#allocation9] sm:$0xff] %v415_v28  ;;  %v422_v20 = vadd.f32 %v414_v29, %v772_v15 }
 0x15f   :  { %429 = vst [vmem:[#allocation9 + $0x30] sm:$0xff] %v421_v30  ;;  %424 = vst [vmem:[#allocation9 + $0x8] sm:$0xff] %v416_v31 }
 0x160   :  { %430 = vst [vmem:[#allocation9 + $0x38] sm:$0xff] %v422_v20 }
 0x161   :  { %644 = shalt.err (!%p641_p0)
}
 0x162   :  { %s645_s30 = scalar_lea.hbm %s860_s6, 1024 }
 0x163   :  { %p646_p1 = scmp.ne.s32.totalorder %s860_s6, %s645_s30  ;;  %p649_p2 = scmp.lt.u32.totalorder %s645_s30, %s860_s6 }
 0x165   :  { %p651_p3 = pnand %p649_p2, %p646_p1 }
 0x167   :  { %654 = shalt.err (!%p651_p3)
}
 0x168   :  { %442 = dma.vmem_to_hbm [thread:$0]  %s437_s26, 1024, %s860_s6, [#allocation5], %s663_s9, %s663_s9, %s664_s10  }
 0x169   :  { %659 = dma.done.wait [#allocation5], 1024  }
 0x16a   :  { %660 = vsyncadd [#allocation5], 4294966272 }
 0x16b   :  { %446 = vsyncpa [#allocation4], 1 }
 0x16c   :  { %447 = vsyncpa [#allocation7], 1 }
 0x16d   :  { %448 = vsyncpa [#allocation5], 1 }

</bundles_post_ra>
